<compile_context>
chip_gen: v5e
topology: v5e:2x2
jax: 0.10.0
libtpu: 0.0.40
codegen_flags: <defaults>
</compile_context>

<pallas_src>
import functools

import jax
import jax.numpy as jnp
from jax import lax
from jax.experimental import pallas as pl
from jax.experimental.pallas import tpu as pltpu


def _node_ce_partial_kernel(node_logits_ref, node_labels_ref, out_ref,
                            *, n_total, tm, tiles_per_core, needs_mask):
    c = pl.program_id(0)          # core (parallel) axis
    i = pl.program_id(1)          # row-tile (arbitrary / reduction) axis

    # Output block doubles as the per-core accumulator (resident across i).
    @pl.when(i == 0)
    def _():
        out_ref[...] = jnp.zeros_like(out_ref)

    nl = node_logits_ref[...].astype(jnp.float32)            # [TM, C]
    labels = node_labels_ref[...]                            # [TM, 1] int32
    tm_b, cdim = nl.shape

    col = lax.broadcasted_iota(jnp.int32, (tm_b, cdim), 1)
    onehot = col == labels                                    # [TM, C] bool

    # Row-local log-sum-exp and target logit.
    m = jnp.max(nl, axis=-1, keepdims=True)                   # [TM, 1]
    lse = m + jnp.log(jnp.sum(jnp.exp(nl - m), axis=-1, keepdims=True))
    tgt = jnp.sum(jnp.where(onehot, nl, 0.0), axis=-1, keepdims=True)
    per_row = lse - tgt                                       # [TM, 1] f32

    if needs_mask:
        row0 = (c * tiles_per_core + i) * tm
        tile_is_full = row0 + tm <= n_total

        @pl.when(tile_is_full)
        def _():
            out_ref[...] += jnp.sum(per_row)

        @pl.when(jnp.logical_not(tile_is_full))
        def _():
            rows = lax.broadcasted_iota(jnp.int32, (tm_b, 1), 0) + row0
            out_ref[...] += jnp.sum(jnp.where(rows < n_total, per_row, 0.0))
    else:
        out_ref[...] += jnp.sum(per_row)


def _physical_vmem_bytes():
    try:
        info = pltpu.get_tpu_info()
        v = getattr(info, "vmem_capacity_bytes", None)
        if v:
            return int(v)
    except Exception:
        pass
    return 64 << 20     # conservative fallback: v7x per-TC VMEM


def learnable_weighted_loss(alpha, node_logits, node_labels, graph_logits,
                            func_label, *, tm=None):
    """alpha: scalar f32; node_logits [N,C] (native dtype, e.g. f32/bf16);
    node_labels [N] int; graph_logits [Cg]; func_label scalar int.
    Returns scalar f32 loss."""
    n, c = node_logits.shape
    itemsize = jnp.dtype(node_logits.dtype).itemsize

    # ---- generation-aware tile sizing ---------------------------------------
    vmem_phys = _physical_vmem_bytes()
    total_budget = min(vmem_phys // 2, 64 << 20)   # v7x: 32 MiB, v5e/v6e: 64 MiB
    per_buffer_budget = total_budget // 4          # 2 pipelined buffers + headroom
    # VMEM bytes per row: lane-padded logits + lane-padded (tm,1) labels.
    c_pad = ((c + 127) // 128) * 128
    per_row_vmem = c_pad * itemsize + 128 * 4
    sub = 8 * max(1, 4 // itemsize)                # packed-sublane multiple

    if tm is None:
        tm = per_buffer_budget // per_row_vmem
    tm = int(tm)
    if n <= 8:
        tm = n                                      # single full-extent block
    else:
        tm = max(8, min(tm, n))
        tm = (tm // sub) * sub if tm >= sub else (tm // 8) * 8

    n_tiles = pl.cdiv(n, tm)
    nc = 2 if n_tiles >= 2 else 1                  # split N across v7x's 2 TCs
    tiles_per_core = pl.cdiv(n_tiles, nc)
    needs_mask = (nc * tiles_per_core * tm) != n
    has_phantom = nc * tiles_per_core > n_tiles

    def row_block_map(ci, ii):
        t = ci * tiles_per_core + ii
        if has_phantom:
            # Phantom trailing tiles on the last core re-read the final real
            # block (cheap); their rows are fully masked out in the kernel.
            t = jnp.minimum(t, n_tiles - 1)
        return (t, 0)

    labels2d = jnp.reshape(node_labels.astype(jnp.int32), (n, 1))

    vmem_limit = min((3 * vmem_phys) // 4,
                     max(32 << 20, 2 * tm * per_row_vmem + (8 << 20)))

    kernel = functools.partial(_node_ce_partial_kernel, n_total=n, tm=tm,
                               tiles_per_core=tiles_per_core,
                               needs_mask=needs_mask)

    partials = pl.pallas_call(
        kernel,
        out_shape=jax.ShapeDtypeStruct((nc, 8, 128), jnp.float32),
        grid_spec=pltpu.PrefetchScalarGridSpec(
            num_scalar_prefetch=0,
            grid=(nc, tiles_per_core),
            in_specs=[
                pl.BlockSpec((tm, c), row_block_map),     # node_logits tile
                pl.BlockSpec((tm, 1), row_block_map),     # node_labels tile
            ],
            out_specs=pl.BlockSpec((1, 8, 128), lambda ci, ii: (ci, 0, 0)),
        ),
        compiler_params=pltpu.CompilerParams(
            dimension_semantics=("parallel", "arbitrary"),
            vmem_limit_bytes=int(vmem_limit)),
    )(node_logits, labels2d)

    node_loss = jnp.sum(partials[:, 0, 0]) / jnp.float32(n)

    # Tiny graph-level CE + alpha combine: a handful of scalar ops, done in
    # XLA per the perf review (keeps the kernel a pure streaming reduction).
    gl = jnp.reshape(graph_logits, (1, -1)).astype(jnp.float32)
    flab = jnp.reshape(func_label, (1,)).astype(jnp.int32)
    g_lse = jax.nn.logsumexp(gl, axis=-1)[0]
    g_tgt = jnp.take_along_axis(gl, flab[:, None], axis=-1)[0, 0]
    func_loss = g_lse - g_tgt

    alpha_f = jnp.asarray(alpha, jnp.float32)
    return alpha_f * node_loss + (1.0 - alpha_f) * func_loss


def _reference(alpha, node_logits, node_labels, graph_logits, func_label):
    def ce(logits, labels):
        lse = jax.nn.logsumexp(logits, axis=-1)
        tgt = jnp.take_along_axis(logits, labels[:, None], axis=-1)[:, 0]
        return jnp.mean(lse - tgt)
    node_loss = ce(node_logits.astype(jnp.float32), node_labels)
    func_loss = ce(jnp.reshape(graph_logits, (1, -1)).astype(jnp.float32),
                   jnp.reshape(func_label, (1,)))
    return alpha * node_loss + (1.0 - alpha) * func_loss


if __name__ == "__main__":
    key = jax.random.PRNGKey(0)
    k1, k2, k3, k4 = jax.random.split(key, 4)

    # --- small test, matches module's expected shapes ------------------------
    N, C, CG = 8, 16, 4                      # nodes, node classes, func classes
    node_logits = jax.random.normal(k1, (N, C), dtype=jnp.float32)
    node_labels = jax.random.randint(k2, (N,), 0, C, dtype=jnp.int32)
    graph_logits = jax.random.normal(k3, (CG,), dtype=jnp.float32)
    func_label = jax.random.randint(k4, (), 0, CG, dtype=jnp.int32)
    alpha = jnp.float32(0.5)                 # nn.Parameter(torch.tensor(0.5))

    loss = learnable_weighted_loss(alpha, node_logits, node_labels,
                                   graph_logits, func_label)
    loss = jax.block_until_ready(loss)
    ref = _reference(alpha, node_logits, node_labels, graph_logits, func_label)
    assert jnp.allclose(loss, ref, rtol=1e-5, atol=1e-5), (loss, ref)

    # --- larger test: bf16 logits, N % tm != 0, 2-core split + phantom tile --
    k5, k6, k7, k8 = jax.random.split(jax.random.PRNGKey(1), 4)
    N2, C2, CG2 = 300, 128, 8
    node_logits2 = jax.random.normal(k5, (N2, C2), dtype=jnp.bfloat16)
    node_labels2 = jax.random.randint(k6, (N2,), 0, C2, dtype=jnp.int32)
    graph_logits2 = jax.random.normal(k7, (CG2,), dtype=jnp.float32)
    func_label2 = jax.random.randint(k8, (), 0, CG2, dtype=jnp.int32)

    loss2 = learnable_weighted_loss(alpha, node_logits2, node_labels2,
                                    graph_logits2, func_label2, tm=128)
    loss2 = jax.block_until_ready(loss2)
    ref2 = _reference(alpha, node_logits2, node_labels2,
                      graph_logits2, func_label2)
    assert jnp.allclose(loss2, ref2, rtol=1e-4, atol=1e-4), (loss2, ref2)

    # --- auto-tiling path (budget-derived tm) on f32 -------------------------
    loss3 = learnable_weighted_loss(alpha, node_logits2.astype(jnp.float32),
                                    node_labels2, graph_logits2, func_label2)
    loss3 = jax.block_until_ready(loss3)
    ref3 = _reference(alpha, node_logits2.astype(jnp.float32), node_labels2,
                      graph_logits2, func_label2)
    assert jnp.allclose(loss3, ref3, rtol=1e-5, atol=1e-5), (loss3, ref3)

    print("KERNEL_OK")
</pallas_src>

<mosaic_0001>
module attributes {stable_mosaic.version = 11 : i64} {
  func.func @_node_ce_partial_kernel(%arg0: i32, %arg1: i32, %arg2: memref<8x16xf32, #tpu.memory_space<vmem>>, %arg3: memref<8x1xi32, #tpu.memory_space<vmem>>, %arg4: memref<1x8x128xf32, #tpu.memory_space<vmem>>) attributes {dimension_semantics = [#tpu.dimension_semantics<parallel>, #tpu.dimension_semantics<arbitrary>], iteration_bounds = array<i64: 1, 1>, scalar_prefetch = 0 : i64, scratch_operands = 0 : i64, tpu.core_type = #tpu.core_type<tc>, window_params = [{transform_indices = @transform_0, window_bounds = array<i64: 8, 16>}, {transform_indices = @transform_1, window_bounds = array<i64: 8, 1>}, {transform_indices = @transform_2, window_bounds = array<i64: 1, 8, 128>}]} {
    %c0_i32 = arith.constant 0 : i32
    %0 = arith.cmpi eq, %arg1, %c0_i32 : i32
    %1 = arith.extui %0 : i1 to i32
    %c0_i32_0 = arith.constant 0 : i32
    %2 = arith.cmpi ne, %1, %c0_i32_0 : i32
    scf.if %2 {
      %cst_14 = arith.constant 0.000000e+00 : f32
      %30 = vector.broadcast %cst_14 : f32 to vector<1x8x128xf32>
      %c0_15 = arith.constant 0 : index
      %c0_16 = arith.constant 0 : index
      %c0_17 = arith.constant 0 : index
      %31 = vector.load %arg4[%c0_15, %c0_16, %c0_17] : memref<1x8x128xf32, #tpu.memory_space<vmem>>, vector<1x8x128xf32>
      tpu.vector_store %arg4[%c0_15, %c0_16, %c0_17], %30 {strides = array<i32>} : memref<1x8x128xf32, #tpu.memory_space<vmem>>, vector<1x8x128xf32>,
    } else {
    }
    %c0 = arith.constant 0 : index
    %c0_1 = arith.constant 0 : index
    %3 = vector.load %arg2[%c0, %c0_1] : memref<8x16xf32, #tpu.memory_space<vmem>>, vector<8x16xf32>
    %c0_2 = arith.constant 0 : index
    %c0_3 = arith.constant 0 : index
    %4 = vector.load %arg3[%c0_2, %c0_3] : memref<8x1xi32, #tpu.memory_space<vmem>>, vector<8x1xi32>
    %5 = tpu.iota {dimensions = array<i32: 1>} : vector<8x16xi32>
    %6 = vector.broadcast %4 : vector<8x1xi32> to vector<8x16xi32>
    %7 = arith.cmpi eq, %5, %6 : vector<8x16xi32>
    %cst = arith.constant dense<0xFF800000> : vector<8xf32>
    %8 = vector.multi_reduction <maximumf>, %3, %cst [1] : vector<8x16xf32> to vector<8xf32>
    %9 = vector.shape_cast %8 : vector<8xf32> to vector<8x1xf32>
    %10 = vector.broadcast %9 : vector<8x1xf32> to vector<8x16xf32>
    %11 = arith.subf %3, %10 : vector<8x16xf32>
    %12 = math.exp %11 : vector<8x16xf32>
    %cst_4 = arith.constant dense<0.000000e+00> : vector<8xf32>
    %13 = vector.multi_reduction <add>, %12, %cst_4 [1] : vector<8x16xf32> to vector<8xf32>
    %14 = vector.shape_cast %13 : vector<8xf32> to vector<8x1xf32>
    %15 = math.log %14 : vector<8x1xf32>
    %16 = arith.addf %9, %15 : vector<8x1xf32>
    %cst_5 = arith.constant 0.000000e+00 : f32
    %17 = vector.broadcast %cst_5 : f32 to vector<8x16xf32>
    %18 = arith.select %7, %3, %17 : vector<8x16xi1>, vector<8x16xf32>
    %cst_6 = arith.constant dense<0.000000e+00> : vector<8xf32>
    %19 = vector.multi_reduction <add>, %18, %cst_6 [1] : vector<8x16xf32> to vector<8xf32>
    %20 = vector.shape_cast %19 : vector<8xf32> to vector<8x1xf32>
    %21 = arith.subf %16, %20 : vector<8x1xf32>
    %c0_7 = arith.constant 0 : index
    %c0_8 = arith.constant 0 : index
    %c0_9 = arith.constant 0 : index
    %22 = vector.load %arg4[%c0_7, %c0_8, %c0_9] : memref<1x8x128xf32, #tpu.memory_space<vmem>>, vector<1x8x128xf32>
    %23 = vector.shape_cast %21 : vector<8x1xf32> to vector<1x8x1xf32>
    %cst_10 = arith.constant dense<0.000000e+00> : vector<1xf32>
    %24 = vector.multi_reduction <add>, %23, %cst_10 [1, 2] : vector<1x8x1xf32> to vector<1xf32>
    %25 = vector.shape_cast %24 : vector<1xf32> to vector<1x1x1xf32>
    %26 = vector.extract %25[0, 0, 0] : f32 from vector<1x1x1xf32>
    %27 = vector.broadcast %26 : f32 to vector<1x8x128xf32>
    %28 = arith.addf %22, %27 : vector<1x8x128xf32>
    %c0_11 = arith.constant 0 : index
    %c0_12 = arith.constant 0 : index
    %c0_13 = arith.constant 0 : index
    %29 = vector.load %arg4[%c0_11, %c0_12, %c0_13] : memref<1x8x128xf32, #tpu.memory_space<vmem>>, vector<1x8x128xf32>
    tpu.vector_store %arg4[%c0_11, %c0_12, %c0_13], %28 {strides = array<i32>} : memref<1x8x128xf32, #tpu.memory_space<vmem>>, vector<1x8x128xf32>,
    return
  }
  func.func @transform_0(%arg0: i32, %arg1: i32) -> (i32, i32) {
    %c1_i32 = arith.constant 1 : i32
    %0 = arith.muli %arg0, %c1_i32 : i32
    %1 = arith.addi %0, %arg1 : i32
    %c0_i32 = arith.constant 0 : i32
    %c0_i32_0 = arith.constant 0 : i32
    return %1, %c0_i32 : i32, i32
  }
  func.func @transform_1(%arg0: i32, %arg1: i32) -> (i32, i32) {
    %c1_i32 = arith.constant 1 : i32
    %0 = arith.muli %arg0, %c1_i32 : i32
    %1 = arith.addi %0, %arg1 : i32
    %c0_i32 = arith.constant 0 : i32
    %c0_i32_0 = arith.constant 0 : i32
    return %1, %c0_i32 : i32, i32
  }
  func.func @transform_2(%arg0: i32, %arg1: i32) -> (i32, i32, i32) {
    %c0_i32 = arith.constant 0 : i32
    %c0_i32_0 = arith.constant 0 : i32
    %c0_i32_1 = arith.constant 0 : i32
    return %arg0, %c0_i32, %c0_i32_0 : i32, i32, i32
  }
}

</mosaic_0001>

<bundles_post_ra>
// kernel: tpu_custom_call.1
= control target key start
LH: loop header
LB: loop body
LE: loop exit
PB: predicated region body
PF: predicated region fallthrough
CT: control target
= control target key end

     0   :  { %vm59_vm0 = vcmask 130048   ;;  %s185_s0 = inlined_call_operand.vmem [shape: f32[8,16], index: 0, kind: input, shape index: {}]   ;;  %s186_s1 = inlined_call_operand.vmem [shape: s32[8,1], index: 1, kind: input, shape index: {}]   ;;  %s187_s2 = inlined_call_operand.hbm [shape: f32[1,8,128], index: 2, kind: output, shape index: {}]  }
   0x1   :  { %v51_v0 = vld [vmem:[%s185_s0] sm:$0xff] }
   0x2   :  { %7 = vsyncpa [#allocation3], 0  ;;  %v60_v1 = vsel %vm59_vm0, %v51_v0, -inf  ;;  %v156_v2 = vmov 0   ;;  %v52_v3 = vld [vmem:[%s186_s1] sm:$0xff]  ;;  %v53_v9 = vlaneseq  ;;  %vm78_vm2 = vcmask 7168  }
   0x3   :  { %125 = vset.pattern.permute.xlu0 %v156_v2  ;;  %s157_s0 = smov [#allocation2]   ;;  %s99_s15 = sshll.u32 %s187_s2, 4  ;;  %s100_s15 = int_to_ptr.hbm [resolvable:$true] %s99_s15 }
   0x4   :  { %61 = vmax.xlane.f32.xlu0 %v60_v1  ;;  %v54_v10 = vand.u32 127, %v53_v9  ;;  %s97_s1 = sshll.u32 %s157_s0, 4  ;;  %s98_s1 = int_to_ptr.vmem [resolvable:$true] %s97_s1 }
  0x18   :  { %56 = vperm.xlu0 %125, %v52_v3  }
  0x77   :  { %v62_v4 = vpop.xlane.xlu0 %61 }
  0x78   :  { %v63_v5 = vsub.f32 %v51_v0, %v62_v4 }
  0x7a   :  { %v64_v6 = vmul.f32 1.442695, %v63_v5 }
  0x7c   :  { %126 = vpow2.f32 %v64_v6 }
  0x82   :  { %v127_v7 = vpop.eup %126 }
  0x83   :  { %v66_v8 = vsel %vm59_vm0, %v127_v7, 0.0 }
  0x84   :  { %67 = vadd.xlane.f32.xlu1 %v66_v8 }
  0x8a   :  { %v57_v11 = vpop.permute.xlu0 %56 }
  0x8b   :  { %vm58_vm1 = vcmp.eq.s32.totalorder %v54_v10, %v57_v11 }
  0x8c   :  { %v72_v12 = vsel %vm58_vm1, %v51_v0, 0.0 }
  0x8d   :  { %v73_v13 = vsel %vm59_vm0, %v72_v12, 0.0 }
  0x8e   :  { %74 = vadd.xlane.f32.xlu1 %v73_v13 }
  0xf7   :  { %v68_v14 = vpop.xlane.xlu1 %67 }
  0xf8   :  { %128 = vlog2.f32 %v68_v14 }
  0xfe   :  { %v129_v15 = vpop.eup %128 }
  0xff   :  { %v70_v16 = vmul.f32 0.6931472, %v129_v15 }
 0x101   :  { %v71_v17 = vadd.f32 %v70_v16, %v62_v4  ;;  %v75_v18 = vpop.xlane.xlu1 %74 }
 0x103   :  { %v76_v19 = vsub.f32 %v71_v17, %v75_v18 }
 0x105   :  { %v79_v20 = vsel %vm78_vm2, %v76_v19, 0.0 }
 0x106   :  { %80 = vadd.xlane.f32.xlu2 %v79_v20 }
 0x179   :  { %v81_v21 = vpop.xlane.xlu2 %80 }
 0x17a   :  { %v82_v22 = vrot.slane %v81_v21, 4 }
 0x17c   :  { %v83_v23 = vadd.f32 %v82_v22, %v81_v21 }
 0x17e   :  { %v84_v24 = vrot.slane %v83_v23, 2 }
 0x180   :  { %v85_v25 = vadd.f32 %v84_v24, %v83_v23 }
 0x182   :  { %v86_v26 = vrot.slane %v85_v25, 1 }
 0x184   :  { %v87_v27 = vadd.f32 %v86_v26, %v85_v25 }
 0x186   :  { %120 = vpush %v87_v27 }
 0x1b7   :  { %s121_s16 = spop %120 }
 0x1b8   :  { %v89_v28 = vstv %s121_s16 }
 0x1b9   :  { %91 = vst [vmem:[#allocation2] sm:$0xff] %v89_v28 }
 0x1ba   :  { %102 = dma.vmem_to_hbm [thread:$0]  %s98_s1, 128, %s100_s15, [#allocation3]  }
 0x1bb   :  { %154 = dma.done.wait [#allocation3], 128  }
 0x1bc   :  { %155 = vsyncadd [#allocation3], 4294967168 }
 0x1bd   :  { %107 = vsyncpa [#allocation3], 1 }

</bundles_post_ra>
